<compile_context>
chip_gen: v5e
topology: v5e:2x2
jax: 0.10.0
libtpu: 0.0.40
codegen_flags: <defaults>
</compile_context>

<pallas_src>
import jax
import jax.numpy as jnp
from jax.experimental import pallas as pl
from jax.experimental.pallas import tpu as pltpu


def rnn_kernel(x_ref, h0_ref, wih_ref, whh_ref, b_ref, wout_ref, bout_ref,
               out_ref, hfin_ref, hs_ref):
    """Whole sequence in one invocation.

    x_ref   : (T*Bp, I)  all timesteps, t-major / batch-minor rows (matmul dtype)
    h0_ref  : (Bp, H)    f32
    wih_ref : (I, H)     = W_ih^T            (matmul dtype)
    whh_ref : (H, H)     = W_hh^T            (matmul dtype)
    b_ref   : (1, H)     = b_ih + b_hh       (f32)
    wout_ref: (H, O)     = W_out^T           (matmul dtype)
    bout_ref: (1, O)     f32
    out_ref : (Bp, T*O)  lane-dense log-probs (wrapper restores (T, B, O))
    hfin_ref: (Bp, H)    final hidden state
    hs_ref  : (T*Bp, H)  f32 VMEM scratch holding every step's hidden state
    """
    TB = x_ref.shape[0]
    Bp, H = h0_ref.shape
    T = TB // Bp
    O = bout_ref.shape[-1]
    mm_dtype = whh_ref.dtype            # MXU operand dtype (f32 or bf16)

    # Batched input projection for ALL timesteps: one MXU pass instead of T, with the
    # combined bias folded in once (broadcast hoisted out of the time loop).
    xw = (jnp.dot(x_ref[...], wih_ref[...], preferred_element_type=jnp.float32)
          + jnp.broadcast_to(b_ref[...], (TB, H)))            # (T*Bp, H), f32

    whh = whh_ref[...]                                         # resident in vregs
    h = h0_ref[...].astype(jnp.float32)                        # carried in registers

    # T is small and static -> fully unrolled; only h @ W_hh^T sits on the serial
    # recurrence path.  Each step's h goes to the VMEM scratch slab.
    # TODO(synk): at large T switch to a T-chunked grid ("arbitrary" axis, weights
    # resident via constant index_map + pl.Buffered(1), h carried in scratch) so the
    # xw / hs slabs never exceed VMEM (matters first on v7x's 64 MiB).
    for t in range(T):
        pre = xw[t * Bp:(t + 1) * Bp, :] + jnp.dot(
            h.astype(mm_dtype), whh, preferred_element_type=jnp.float32)
        h = jnp.tanh(pre)               # activation math stays f32 (v5e has no bf16 VPU/EUP)
        hs_ref[t * Bp:(t + 1) * Bp, :] = h      # static, sublane-aligned (Bp % 8 == 0)

    # Batched output head: one MXU pass for the whole sequence.
    logits = (jnp.dot(hs_ref[...].astype(mm_dtype), wout_ref[...],
                      preferred_element_type=jnp.float32)
              + jnp.broadcast_to(bout_ref[...], (TB, O)))      # (T*Bp, O), f32

    # LogSoftmax over the class dim (dim=2 of the logical (T, B, O) output), in f32,
    # computed in the natural (T*Bp, O) layout.
    m = jnp.max(logits, axis=-1, keepdims=True)
    shifted = logits - m
    lse = jnp.log(jnp.sum(jnp.exp(shifted), axis=-1, keepdims=True))
    logp = (shifted - lse).astype(out_ref.dtype)               # (T*Bp, O)

    # Lane-dense presentation: pack the T (Bp, O) chunks side-by-side along lanes so
    # the output slab is (Bp, T*O) = (8, 128) here -> dense vregs / dense HBM
    # writeback instead of a lane-sparse (T*Bp, O) slab.
    for t in range(T):
        out_ref[:, t * O:(t + 1) * O] = logp[t * Bp:(t + 1) * Bp, :]

    hfin_ref[...] = h.astype(hfin_ref.dtype)                   # final hidden, written once


def prepare_params(w_ih, w_hh, b_ih, b_hh, w_out, b_out, *, matmul_dtype=jnp.float32):
    """One-time parameter prep: transposes / casts / bias combine hoisted out of the
    per-call path.  matmul_dtype=bf16 halves weight VMEM and shortens every serial
    h@W_hh MXU push ~3x (v5e/v6e/v7x MXUs are all bf16-native); accumulation and all
    elementwise math stay f32 either way."""
    return dict(
        wih_t=jnp.asarray(w_ih.T, matmul_dtype),               # (I, H)
        whh_t=jnp.asarray(w_hh.T, matmul_dtype),               # (H, H)
        wout_t=jnp.asarray(w_out.T, matmul_dtype),             # (H, O)
        b=jnp.asarray((b_ih + b_hh)[None, :], jnp.float32),    # (1, H) combined bias
        bout=jnp.asarray(b_out[None, :], jnp.float32),         # (1, O)
    )


@jax.jit
def simple_rnn_forward(x, h0, params):
    """x: (T, B, I) seq-first (nn.RNN default), h0: (1, B, H).
    Returns (log_probs (T, B, O), hidden (1, B, H))."""
    T, B, I = x.shape
    H = params["whh_t"].shape[0]
    O = params["wout_t"].shape[1]
    mm_dtype = params["whh_t"].dtype

    # Pad batch to the f32 sublane height (8) so vregs / MXU rows aren't 3/4 wasted.
    # TODO(synk): if several independent sequences exist at the call site, stack them
    # along this padded-batch dim (and on v7x shard it over the 2 TensorCores via a
    # "parallel" grid axis) — the recurrence is independent per batch row.
    Bp = max(8, ((B + 7) // 8) * 8)
    pad = Bp - B
    xp = jnp.pad(x, ((0, 0), (0, pad), (0, 0))) if pad else x
    h0p = jnp.pad(h0[0], ((0, pad), (0, 0))) if pad else h0[0]          # (Bp, H)
    x2 = xp.reshape(T * Bp, I).astype(mm_dtype)                         # (T*Bp, I)

    vmem = lambda: pl.BlockSpec(memory_space=pltpu.MemorySpace.VMEM)

    out_flat, h_fin = pl.pallas_call(
        rnn_kernel,
        out_shape=(jax.ShapeDtypeStruct((Bp, T * O), jnp.float32),
                   jax.ShapeDtypeStruct((Bp, H), jnp.float32)),
        in_specs=[vmem() for _ in range(7)],
        out_specs=(vmem(), vmem()),
        scratch_shapes=[pltpu.VMEM((T * Bp, H), jnp.float32)],
    )(x2, h0p.astype(jnp.float32), params["wih_t"], params["whh_t"],
      params["b"], params["wout_t"], params["bout"])

    # Undo the lane-dense packing + batch padding (fused into the same jit).
    log_probs = out_flat.reshape(Bp, T, O).transpose(1, 0, 2)[:, :B, :]  # (T, B, O)
    hidden = h_fin[:B][None]                                             # (1, B, H)
    return log_probs, hidden


def reference_forward(x, h0, w_ih, w_hh, b_ih, b_hh, w_out, b_out):
    """Pure-JAX reference matching PyTorch SimpleRNN.forward semantics."""
    def step(h, x_t):
        h_new = jnp.tanh(x_t @ w_ih.T + b_ih + h @ w_hh.T + b_hh)
        return h_new, h_new
    h_last, hs = jax.lax.scan(step, h0[0], x)
    logits = hs @ w_out.T + b_out
    logp = jax.nn.log_softmax(logits, axis=2)
    return logp, h_last[None]


if __name__ == "__main__":
    T, B, I, H, O = 8, 2, 16, 32, 16

    key = jax.random.PRNGKey(0)
    ks = jax.random.split(key, 8)
    scale = 1.0 / jnp.sqrt(H)
    w_ih = jax.random.uniform(ks[0], (H, I), jnp.float32, -scale, scale)
    w_hh = jax.random.uniform(ks[1], (H, H), jnp.float32, -scale, scale)
    b_ih = jax.random.uniform(ks[2], (H,), jnp.float32, -scale, scale)
    b_hh = jax.random.uniform(ks[3], (H,), jnp.float32, -scale, scale)
    w_out = jax.random.uniform(ks[4], (O, H), jnp.float32, -scale, scale)
    b_out = jax.random.uniform(ks[5], (O,), jnp.float32, -scale, scale)

    x = jax.random.normal(ks[6], (T, B, I), jnp.float32)
    h0 = jnp.zeros((1, B, H), jnp.float32)    # init_hidden() analogue (batch-broadcast)

    ref_out, ref_hidden = reference_forward(x, h0, w_ih, w_hh, b_ih, b_hh, w_out, b_out)

    # f32 correctness build: tight tolerance against the pure-JAX reference.
    params_f32 = prepare_params(w_ih, w_hh, b_ih, b_hh, w_out, b_out,
                                matmul_dtype=jnp.float32)
    out, hidden = jax.block_until_ready(simple_rnn_forward(x, h0, params_f32))
    assert jnp.allclose(out, ref_out, atol=1e-5, rtol=1e-5)
    assert jnp.allclose(hidden, ref_hidden, atol=1e-5, rtol=1e-5)

    # bf16 MXU-operand build (recommended perf default on v5e/v6e/v7x): relaxed tol.
    params_bf16 = prepare_params(w_ih, w_hh, b_ih, b_hh, w_out, b_out,
                                 matmul_dtype=jnp.bfloat16)
    out_bf, hidden_bf = jax.block_until_ready(simple_rnn_forward(x, h0, params_bf16))
    assert jnp.allclose(out_bf, ref_out, atol=2e-2, rtol=2e-2)
    assert jnp.allclose(hidden_bf, ref_hidden, atol=2e-2, rtol=2e-2)

    print("KERNEL_OK")
</pallas_src>

<mosaic_0001>
module attributes {stable_mosaic.version = 11 : i64} {
  func.func @rnn_kernel(%arg0: memref<64x16xf32, #tpu.memory_space<vmem>>, %arg1: memref<8x32xf32, #tpu.memory_space<vmem>>, %arg2: memref<16x32xf32, #tpu.memory_space<vmem>>, %arg3: memref<32x32xf32, #tpu.memory_space<vmem>>, %arg4: memref<1x32xf32, #tpu.memory_space<vmem>>, %arg5: memref<32x16xf32, #tpu.memory_space<vmem>>, %arg6: memref<1x16xf32, #tpu.memory_space<vmem>>, %arg7: memref<8x128xf32, #tpu.memory_space<vmem>>, %arg8: memref<8x32xf32, #tpu.memory_space<vmem>>, %arg9: memref<64x32xf32, #tpu.memory_space<vmem>>) attributes {dimension_semantics = [], scalar_prefetch = 0 : i64, scratch_operands = 1 : i64, tpu.core_type = #tpu.core_type<tc>} {
    %c0 = arith.constant 0 : index
    %c0_0 = arith.constant 0 : index
    %0 = vector.load %arg0[%c0, %c0_0] : memref<64x16xf32, #tpu.memory_space<vmem>>, vector<64x16xf32>
    %c0_1 = arith.constant 0 : index
    %c0_2 = arith.constant 0 : index
    %1 = vector.load %arg2[%c0_1, %c0_2] : memref<16x32xf32, #tpu.memory_space<vmem>>, vector<16x32xf32>
    %cst = arith.constant dense<0.000000e+00> : vector<64x32xf32>
    %2 = tpu.matmul %0, %1, %cst {dimension_numbers = #tpu.dot_dimension_numbers<[1], [0], [0], [1], [0, 0, 1, 1], [], []>} : vector<64x16xf32>, vector<16x32xf32>, vector<64x32xf32> -> vector<64x32xf32>
    %c0_3 = arith.constant 0 : index
    %c0_4 = arith.constant 0 : index
    %3 = vector.load %arg4[%c0_3, %c0_4] : memref<1x32xf32, #tpu.memory_space<vmem>>, vector<1x32xf32>
    %4 = vector.shape_cast %3 : vector<1x32xf32> to vector<1x32xf32>
    %5 = vector.broadcast %4 : vector<1x32xf32> to vector<64x32xf32>
    %6 = arith.addf %2, %5 : vector<64x32xf32>
    %c0_5 = arith.constant 0 : index
    %c0_6 = arith.constant 0 : index
    %7 = vector.load %arg3[%c0_5, %c0_6] : memref<32x32xf32, #tpu.memory_space<vmem>>, vector<32x32xf32>
    %c0_7 = arith.constant 0 : index
    %c0_8 = arith.constant 0 : index
    %8 = vector.load %arg1[%c0_7, %c0_8] : memref<8x32xf32, #tpu.memory_space<vmem>>, vector<8x32xf32>
    %9 = vector.extract_strided_slice %6 {offsets = [0, 0], sizes = [8, 32], strides = [1, 1]} : vector<64x32xf32> to vector<8x32xf32>
    %cst_9 = arith.constant dense<0.000000e+00> : vector<8x32xf32>
    %10 = tpu.matmul %8, %7, %cst_9 {dimension_numbers = #tpu.dot_dimension_numbers<[1], [0], [0], [1], [0, 0, 1, 1], [], []>} : vector<8x32xf32>, vector<32x32xf32>, vector<8x32xf32> -> vector<8x32xf32>
    %11 = arith.addf %9, %10 : vector<8x32xf32>
    %12 = math.tanh %11 : vector<8x32xf32>
    %c0_10 = arith.constant 0 : index
    %c0_11 = arith.constant 0 : index
    %13 = vector.load %arg9[%c0_10, %c0_11] : memref<64x32xf32, #tpu.memory_space<vmem>>, vector<8x32xf32>
    tpu.vector_store %arg9[%c0_10, %c0_11], %12 {strides = array<i32>} : memref<64x32xf32, #tpu.memory_space<vmem>>, vector<8x32xf32>,
    %14 = vector.extract_strided_slice %6 {offsets = [8, 0], sizes = [8, 32], strides = [1, 1]} : vector<64x32xf32> to vector<8x32xf32>
    %cst_12 = arith.constant dense<0.000000e+00> : vector<8x32xf32>
    %15 = tpu.matmul %12, %7, %cst_12 {dimension_numbers = #tpu.dot_dimension_numbers<[1], [0], [0], [1], [0, 0, 1, 1], [], []>} : vector<8x32xf32>, vector<32x32xf32>, vector<8x32xf32> -> vector<8x32xf32>
    %16 = arith.addf %14, %15 : vector<8x32xf32>
    %17 = math.tanh %16 : vector<8x32xf32>
    %c8 = arith.constant 8 : index
    %c0_13 = arith.constant 0 : index
    %18 = vector.load %arg9[%c8, %c0_13] : memref<64x32xf32, #tpu.memory_space<vmem>>, vector<8x32xf32>
    tpu.vector_store %arg9[%c8, %c0_13], %17 {strides = array<i32>} : memref<64x32xf32, #tpu.memory_space<vmem>>, vector<8x32xf32>,
    %19 = vector.extract_strided_slice %6 {offsets = [16, 0], sizes = [8, 32], strides = [1, 1]} : vector<64x32xf32> to vector<8x32xf32>
    %cst_14 = arith.constant dense<0.000000e+00> : vector<8x32xf32>
    %20 = tpu.matmul %17, %7, %cst_14 {dimension_numbers = #tpu.dot_dimension_numbers<[1], [0], [0], [1], [0, 0, 1, 1], [], []>} : vector<8x32xf32>, vector<32x32xf32>, vector<8x32xf32> -> vector<8x32xf32>
    %21 = arith.addf %19, %20 : vector<8x32xf32>
    %22 = math.tanh %21 : vector<8x32xf32>
    %c16 = arith.constant 16 : index
    %c0_15 = arith.constant 0 : index
    %23 = vector.load %arg9[%c16, %c0_15] : memref<64x32xf32, #tpu.memory_space<vmem>>, vector<8x32xf32>
    tpu.vector_store %arg9[%c16, %c0_15], %22 {strides = array<i32>} : memref<64x32xf32, #tpu.memory_space<vmem>>, vector<8x32xf32>,
    %24 = vector.extract_strided_slice %6 {offsets = [24, 0], sizes = [8, 32], strides = [1, 1]} : vector<64x32xf32> to vector<8x32xf32>
    %cst_16 = arith.constant dense<0.000000e+00> : vector<8x32xf32>
    %25 = tpu.matmul %22, %7, %cst_16 {dimension_numbers = #tpu.dot_dimension_numbers<[1], [0], [0], [1], [0, 0, 1, 1], [], []>} : vector<8x32xf32>, vector<32x32xf32>, vector<8x32xf32> -> vector<8x32xf32>
    %26 = arith.addf %24, %25 : vector<8x32xf32>
    %27 = math.tanh %26 : vector<8x32xf32>
    %c24 = arith.constant 24 : index
    %c0_17 = arith.constant 0 : index
    %28 = vector.load %arg9[%c24, %c0_17] : memref<64x32xf32, #tpu.memory_space<vmem>>, vector<8x32xf32>
    tpu.vector_store %arg9[%c24, %c0_17], %27 {strides = array<i32>} : memref<64x32xf32, #tpu.memory_space<vmem>>, vector<8x32xf32>,
    %29 = vector.extract_strided_slice %6 {offsets = [32, 0], sizes = [8, 32], strides = [1, 1]} : vector<64x32xf32> to vector<8x32xf32>
    %cst_18 = arith.constant dense<0.000000e+00> : vector<8x32xf32>
    %30 = tpu.matmul %27, %7, %cst_18 {dimension_numbers = #tpu.dot_dimension_numbers<[1], [0], [0], [1], [0, 0, 1, 1], [], []>} : vector<8x32xf32>, vector<32x32xf32>, vector<8x32xf32> -> vector<8x32xf32>
    %31 = arith.addf %29, %30 : vector<8x32xf32>
    %32 = math.tanh %31 : vector<8x32xf32>
    %c32 = arith.constant 32 : index
    %c0_19 = arith.constant 0 : index
    %33 = vector.load %arg9[%c32, %c0_19] : memref<64x32xf32, #tpu.memory_space<vmem>>, vector<8x32xf32>
    tpu.vector_store %arg9[%c32, %c0_19], %32 {strides = array<i32>} : memref<64x32xf32, #tpu.memory_space<vmem>>, vector<8x32xf32>,
    %34 = vector.extract_strided_slice %6 {offsets = [40, 0], sizes = [8, 32], strides = [1, 1]} : vector<64x32xf32> to vector<8x32xf32>
    %cst_20 = arith.constant dense<0.000000e+00> : vector<8x32xf32>
    %35 = tpu.matmul %32, %7, %cst_20 {dimension_numbers = #tpu.dot_dimension_numbers<[1], [0], [0], [1], [0, 0, 1, 1], [], []>} : vector<8x32xf32>, vector<32x32xf32>, vector<8x32xf32> -> vector<8x32xf32>
    %36 = arith.addf %34, %35 : vector<8x32xf32>
    %37 = math.tanh %36 : vector<8x32xf32>
    %c40 = arith.constant 40 : index
    %c0_21 = arith.constant 0 : index
    %38 = vector.load %arg9[%c40, %c0_21] : memref<64x32xf32, #tpu.memory_space<vmem>>, vector<8x32xf32>
    tpu.vector_store %arg9[%c40, %c0_21], %37 {strides = array<i32>} : memref<64x32xf32, #tpu.memory_space<vmem>>, vector<8x32xf32>,
    %39 = vector.extract_strided_slice %6 {offsets = [48, 0], sizes = [8, 32], strides = [1, 1]} : vector<64x32xf32> to vector<8x32xf32>
    %cst_22 = arith.constant dense<0.000000e+00> : vector<8x32xf32>
    %40 = tpu.matmul %37, %7, %cst_22 {dimension_numbers = #tpu.dot_dimension_numbers<[1], [0], [0], [1], [0, 0, 1, 1], [], []>} : vector<8x32xf32>, vector<32x32xf32>, vector<8x32xf32> -> vector<8x32xf32>
    %41 = arith.addf %39, %40 : vector<8x32xf32>
    %42 = math.tanh %41 : vector<8x32xf32>
    %c48 = arith.constant 48 : index
    %c0_23 = arith.constant 0 : index
    %43 = vector.load %arg9[%c48, %c0_23] : memref<64x32xf32, #tpu.memory_space<vmem>>, vector<8x32xf32>
    tpu.vector_store %arg9[%c48, %c0_23], %42 {strides = array<i32>} : memref<64x32xf32, #tpu.memory_space<vmem>>, vector<8x32xf32>,
    %44 = vector.extract_strided_slice %6 {offsets = [56, 0], sizes = [8, 32], strides = [1, 1]} : vector<64x32xf32> to vector<8x32xf32>
    %cst_24 = arith.constant dense<0.000000e+00> : vector<8x32xf32>
    %45 = tpu.matmul %42, %7, %cst_24 {dimension_numbers = #tpu.dot_dimension_numbers<[1], [0], [0], [1], [0, 0, 1, 1], [], []>} : vector<8x32xf32>, vector<32x32xf32>, vector<8x32xf32> -> vector<8x32xf32>
    %46 = arith.addf %44, %45 : vector<8x32xf32>
    %47 = math.tanh %46 : vector<8x32xf32>
    %c56 = arith.constant 56 : index
    %c0_25 = arith.constant 0 : index
    %48 = vector.load %arg9[%c56, %c0_25] : memref<64x32xf32, #tpu.memory_space<vmem>>, vector<8x32xf32>
    tpu.vector_store %arg9[%c56, %c0_25], %47 {strides = array<i32>} : memref<64x32xf32, #tpu.memory_space<vmem>>, vector<8x32xf32>,
    %c0_26 = arith.constant 0 : index
    %c0_27 = arith.constant 0 : index
    %49 = vector.load %arg9[%c0_26, %c0_27] : memref<64x32xf32, #tpu.memory_space<vmem>>, vector<64x32xf32>
    %c0_28 = arith.constant 0 : index
    %c0_29 = arith.constant 0 : index
    %50 = vector.load %arg5[%c0_28, %c0_29] : memref<32x16xf32, #tpu.memory_space<vmem>>, vector<32x16xf32>
    %cst_30 = arith.constant dense<0.000000e+00> : vector<64x16xf32>
    %51 = tpu.matmul %49, %50, %cst_30 {dimension_numbers = #tpu.dot_dimension_numbers<[1], [0], [0], [1], [0, 0, 1, 1], [], []>} : vector<64x32xf32>, vector<32x16xf32>, vector<64x16xf32> -> vector<64x16xf32>
    %c0_31 = arith.constant 0 : index
    %c0_32 = arith.constant 0 : index
    %52 = vector.load %arg6[%c0_31, %c0_32] : memref<1x16xf32, #tpu.memory_space<vmem>>, vector<1x16xf32>
    %53 = vector.shape_cast %52 : vector<1x16xf32> to vector<1x16xf32>
    %54 = vector.broadcast %53 : vector<1x16xf32> to vector<64x16xf32>
    %55 = arith.addf %51, %54 : vector<64x16xf32>
    %cst_33 = arith.constant dense<0xFF800000> : vector<64xf32>
    %56 = vector.multi_reduction <maximumf>, %55, %cst_33 [1] : vector<64x16xf32> to vector<64xf32>
    %57 = vector.shape_cast %56 : vector<64xf32> to vector<64x1xf32>
    %58 = vector.broadcast %57 : vector<64x1xf32> to vector<64x16xf32>
    %59 = arith.subf %55, %58 : vector<64x16xf32>
    %60 = math.exp %59 : vector<64x16xf32>
    %cst_34 = arith.constant dense<0.000000e+00> : vector<64xf32>
    %61 = vector.multi_reduction <add>, %60, %cst_34 [1] : vector<64x16xf32> to vector<64xf32>
    %62 = vector.shape_cast %61 : vector<64xf32> to vector<64x1xf32>
    %63 = math.log %62 : vector<64x1xf32>
    %64 = vector.broadcast %63 : vector<64x1xf32> to vector<64x16xf32>
    %65 = arith.subf %59, %64 : vector<64x16xf32>
    %66 = vector.extract_strided_slice %65 {offsets = [0, 0], sizes = [8, 16], strides = [1, 1]} : vector<64x16xf32> to vector<8x16xf32>
    %c0_35 = arith.constant 0 : index
    %c0_36 = arith.constant 0 : index
    %67 = vector.load %arg7[%c0_35, %c0_36] : memref<8x128xf32, #tpu.memory_space<vmem>>, vector<8x16xf32>
    tpu.vector_store %arg7[%c0_35, %c0_36], %66 {strides = array<i32>} : memref<8x128xf32, #tpu.memory_space<vmem>>, vector<8x16xf32>,
    %68 = vector.extract_strided_slice %65 {offsets = [8, 0], sizes = [8, 16], strides = [1, 1]} : vector<64x16xf32> to vector<8x16xf32>
    %c0_37 = arith.constant 0 : index
    %c16_38 = arith.constant 16 : index
    %69 = vector.load %arg7[%c0_37, %c16_38] : memref<8x128xf32, #tpu.memory_space<vmem>>, vector<8x16xf32>
    tpu.vector_store %arg7[%c0_37, %c16_38], %68 {strides = array<i32>} : memref<8x128xf32, #tpu.memory_space<vmem>>, vector<8x16xf32>,
    %70 = vector.extract_strided_slice %65 {offsets = [16, 0], sizes = [8, 16], strides = [1, 1]} : vector<64x16xf32> to vector<8x16xf32>
    %c0_39 = arith.constant 0 : index
    %c32_40 = arith.constant 32 : index
    %71 = vector.load %arg7[%c0_39, %c32_40] : memref<8x128xf32, #tpu.memory_space<vmem>>, vector<8x16xf32>
    tpu.vector_store %arg7[%c0_39, %c32_40], %70 {strides = array<i32>} : memref<8x128xf32, #tpu.memory_space<vmem>>, vector<8x16xf32>,
    %72 = vector.extract_strided_slice %65 {offsets = [24, 0], sizes = [8, 16], strides = [1, 1]} : vector<64x16xf32> to vector<8x16xf32>
    %c0_41 = arith.constant 0 : index
    %c48_42 = arith.constant 48 : index
    %73 = vector.load %arg7[%c0_41, %c48_42] : memref<8x128xf32, #tpu.memory_space<vmem>>, vector<8x16xf32>
    tpu.vector_store %arg7[%c0_41, %c48_42], %72 {strides = array<i32>} : memref<8x128xf32, #tpu.memory_space<vmem>>, vector<8x16xf32>,
    %74 = vector.extract_strided_slice %65 {offsets = [32, 0], sizes = [8, 16], strides = [1, 1]} : vector<64x16xf32> to vector<8x16xf32>
    %c0_43 = arith.constant 0 : index
    %c64 = arith.constant 64 : index
    %75 = vector.load %arg7[%c0_43, %c64] : memref<8x128xf32, #tpu.memory_space<vmem>>, vector<8x16xf32>
    tpu.vector_store %arg7[%c0_43, %c64], %74 {strides = array<i32>} : memref<8x128xf32, #tpu.memory_space<vmem>>, vector<8x16xf32>,
    %76 = vector.extract_strided_slice %65 {offsets = [40, 0], sizes = [8, 16], strides = [1, 1]} : vector<64x16xf32> to vector<8x16xf32>
    %c0_44 = arith.constant 0 : index
    %c80 = arith.constant 80 : index
    %77 = vector.load %arg7[%c0_44, %c80] : memref<8x128xf32, #tpu.memory_space<vmem>>, vector<8x16xf32>
    tpu.vector_store %arg7[%c0_44, %c80], %76 {strides = array<i32>} : memref<8x128xf32, #tpu.memory_space<vmem>>, vector<8x16xf32>,
    %78 = vector.extract_strided_slice %65 {offsets = [48, 0], sizes = [8, 16], strides = [1, 1]} : vector<64x16xf32> to vector<8x16xf32>
    %c0_45 = arith.constant 0 : index
    %c96 = arith.constant 96 : index
    %79 = vector.load %arg7[%c0_45, %c96] : memref<8x128xf32, #tpu.memory_space<vmem>>, vector<8x16xf32>
    tpu.vector_store %arg7[%c0_45, %c96], %78 {strides = array<i32>} : memref<8x128xf32, #tpu.memory_space<vmem>>, vector<8x16xf32>,
    %80 = vector.extract_strided_slice %65 {offsets = [56, 0], sizes = [8, 16], strides = [1, 1]} : vector<64x16xf32> to vector<8x16xf32>
    %c0_46 = arith.constant 0 : index
    %c112 = arith.constant 112 : index
    %81 = vector.load %arg7[%c0_46, %c112] : memref<8x128xf32, #tpu.memory_space<vmem>>, vector<8x16xf32>
    tpu.vector_store %arg7[%c0_46, %c112], %80 {strides = array<i32>} : memref<8x128xf32, #tpu.memory_space<vmem>>, vector<8x16xf32>,
    %c0_47 = arith.constant 0 : index
    %c0_48 = arith.constant 0 : index
    %82 = vector.load %arg8[%c0_47, %c0_48] : memref<8x32xf32, #tpu.memory_space<vmem>>, vector<8x32xf32>
    tpu.vector_store %arg8[%c0_47, %c0_48], %47 {strides = array<i32>} : memref<8x32xf32, #tpu.memory_space<vmem>>, vector<8x32xf32>,
    return
  }
}

</mosaic_0001>

<bundles_post_ra>
// kernel: simple_rnn_forward.1
= control target key start
LH: loop header
LB: loop body
LE: loop exit
PB: predicated region body
PF: predicated region fallthrough
CT: control target
= control target key end

     0   :  { %vm42_vm0 = vcmask 130048   ;;  %vm113_vm1 = vcmask 261120   ;;  %s639_s19 = smov 48   ;;  %s640_s20 = smov 96   ;;  %vm504_vm2 = vcmask 261248   ;;  %vm510_vm3 = vcmask 392448   ;;  %s873_s2 = inlined_call_operand.vmem [shape: f32[16,32], index: 2, kind: input, shape index: {}]   ;;  %s874_s0 = inlined_call_operand.vmem [shape: f32[64,16], index: 0, kind: input, shape index: {}]   ;;  %s875_s3 = inlined_call_operand.vmem [shape: f32[32,32], index: 3, kind: input, shape index: {}]   ;;  %s876_s4 = inlined_call_operand.vmem [shape: f32[1,32], index: 4, kind: input, shape index: {}]   ;;  %s877_s1 = inlined_call_operand.vmem [shape: f32[8,32], index: 1, kind: input, shape index: {}]   ;;  %s878_s5 = inlined_call_operand.vmem [shape: f32[32,16], index: 5, kind: input, shape index: {}]   ;;  %s879_s6 = inlined_call_operand.vmem [shape: f32[1,16], index: 6, kind: input, shape index: {}]   ;;  %s880_s8 = inlined_call_operand.vmem [shape: f32[8,32], index: 8, kind: output, shape index: {1}]   ;;  %s881_s7 = inlined_call_operand.vmem [shape: f32[8,128], index: 7, kind: output, shape index: {0}]  }
   0x1   :  { %v37_v0 = vld [vmem:[%s873_s2 + $0x8] sm:$0xff]  ;;  %v36_v1 = vld [vmem:[%s873_s2] sm:$0xff]  ;;  %v35_v2 = vld [vmem:[%s874_s0 + $0x38] sm:$0xff]  ;;  %s641_s21 = smov 80   ;;  %s642_s22 = smov 32   ;;  %vm516_vm4 = vcmask 523648  }
   0x2   :  { %575 = vmatpush.msra.mxu2 %v37_v0  ;;  %v111_v3 = vld [vmem:[%s875_s3 + $0x18] sm:$0xff]  ;;  %81 = vmatpush.msra.mxu0 %v37_v0  ;;  %v28_v4 = vld [vmem:[%s874_s0] sm:$0xff]  ;;  %v110_v5 = vld [vmem:[%s875_s3 + $0x10] sm:$0xff]  ;;  %s643_s25 = smov 64   ;;  %s644_s29 = smov 112   ;;  %vm522_vm5 = vcmask 654848  }
   0x3   :  { %181 = vmatpush.msra.mxu3 %v111_v3  ;;  %207 = vmatpush.msra.mxu1 %v111_v3  ;;  %v109_v6 = vld [vmem:[%s875_s3 + $0x8] sm:$0xff]  ;;  %v108_v7 = vld [vmem:[%s875_s3] sm:$0xff]  ;;  %v30_v17 = vld [vmem:[%s874_s0 + $0x10] sm:$0xff]  ;;  %vm528_vm6 = vcmask 786048   ;;  %vm534_vm7 = vcmask 917248   ;;  %vm540_vm8 = vcmask 1048448  }
   0x4   :  { %576 = vmatpush.msra.mxu2 %v36_v1  ;;  %82 = vmatpush.msra.mxu0 %v36_v1  ;;  %v112_v8 = vld [vmem:[%s877_s1] sm:$0xff]  ;;  %v29_v9 = vld [vmem:[%s874_s0 + $0x8] sm:$0xff]  ;;  %v31_v23 = vld [vmem:[%s874_s0 + $0x18] sm:$0xff] }
   0x5   :  { %558 = vmatmul.msk.f32.vlgmr.msra.gmra.mxu2 %vm42_vm0, %v35_v2  ;;  %551 = vmatmul.msk.f32.vlgmr.msra.gmra.mxu0 %vm42_vm0, %v28_v4  ;;  %v729_v12 = vld [vmem:[%s876_s4] ss:$0 sm:$0xff]  ;;  %v333_v35 = vld [vmem:[%s878_s5 + $0x18] sm:$0xff]  ;;  %v332_v36 = vld [vmem:[%s878_s5 + $0x10] sm:$0xff] }
   0x6   :  { %129 = vmatpush.msrb.mxu2 %v111_v3  ;;  %182 = vmatpush.msra.mxu3 %v110_v5  ;;  %v32_v29 = vld [vmem:[%s874_s0 + $0x20] sm:$0xff]  ;;  %v33_v37 = vld [vmem:[%s874_s0 + $0x28] sm:$0xff]  ;;  %v34_v46 = vld [vmem:[%s874_s0 + $0x30] sm:$0xff] }
   0x7   :  { %208 = vmatpush.msra.mxu1 %v110_v5  ;;  %v331_v38 = vld [vmem:[%s878_s5 + $0x8] sm:$0xff]  ;;  %v330_v39 = vld [vmem:[%s878_s5] sm:$0xff] }
   0x8   :  { %130 = vmatpush.msrb.mxu2 %v110_v5  ;;  %183 = vmatpush.msra.mxu3 %v109_v6  ;;  %v793_v0 = vld [vmem:[%s879_s6] ss:$0 sm:$0xff] }
   0x9   :  { %209 = vmatpush.msra.mxu1 %v109_v6 }
   0xa   :  { %131 = vmatpush.msrb.mxu2 %v109_v6  ;;  %184 = vmatpush.msra.mxu3 %v108_v7 }
   0xb   :  { %210 = vmatpush.msra.mxu1 %v108_v7 }
   0xc   :  { %259 = vmatpush.msrb.mxu3 %v111_v3  ;;  %132 = vmatpush.msrb.mxu2 %v108_v7 }
   0xd   :  { %285 = vmatpush.msrb.mxu1 %v111_v3  ;;  %559 = vmatmul.msk.f32.vlgmr.msrb.gmra.mxu2 %vm113_vm1, %v112_v8 }
   0xe   :  { %260 = vmatpush.msrb.mxu3 %v110_v5  ;;  %155 = vmatpush.msra.mxu2 %v111_v3 }
   0xf   :  { %286 = vmatpush.msrb.mxu1 %v110_v5  ;;  %552 = vmatmul.msk.f32.gmra.mxu0 %vm42_vm0, %v29_v9 }
  0x10   :  { %261 = vmatpush.msrb.mxu3 %v109_v6  ;;  %156 = vmatpush.msra.mxu2 %v110_v5 }
  0x11   :  { %287 = vmatpush.msrb.mxu1 %v109_v6 }
  0x12   :  { %262 = vmatpush.msrb.mxu3 %v108_v7  ;;  %157 = vmatpush.msra.mxu2 %v109_v6 }
  0x13   :  { %288 = vmatpush.msrb.mxu1 %v108_v7 }
  0x14   :  { %158 = vmatpush.msra.mxu2 %v108_v7 }
  0x16   :  { %233 = vmatpush.msrb.mxu2 %v111_v3 }
  0x17   :  { %553 = vmatmul.msk.f32.gmra.mxu0 %vm42_vm0, %v30_v17 }
  0x18   :  { %234 = vmatpush.msrb.mxu2 %v110_v5 }
  0x1a   :  { %235 = vmatpush.msrb.mxu2 %v109_v6 }
  0x1c   :  { %236 = vmatpush.msrb.mxu2 %v108_v7 }
  0x1f   :  { %554 = vmatmul.msk.f32.gmra.mxu0 %vm42_vm0, %v31_v23 }
  0x27   :  { %555 = vmatmul.msk.f32.gmra.mxu0 %vm42_vm0, %v32_v29 }
  0x2f   :  { %556 = vmatmul.msk.f32.gmra.mxu0 %vm42_vm0, %v33_v37 }
  0x37   :  { %557 = vmatmul.msk.f32.gmra.mxu0 %vm42_vm0, %v34_v46 }
  0x82   :  { %v84_v11 = vpop.f32.mrf.mxu0 }
  0x83   :  { %v85_v13 = vadd.f32 %v729_v12, %v84_v11 }
  0x88   :  { %v724_v10 = vpop.f32.mrf.mxu2 }
  0x8c   :  { %v87_v18 = vpop.f32.mrf.mxu0 }
  0x8d   :  { %v88_v19 = vadd.f32 %v729_v12, %v87_v18 }
  0x90   :  { %v134_v14 = vpop.f32.mrf.mxu2 }
  0x91   :  { %v137_v15 = vadd.f32 %v134_v14, %v85_v13 }
  0x93   :  { %590 = vtanh.f32 %v137_v15 }
  0x94   :  { %v90_v24 = vpop.f32.mrf.mxu0 }
  0x95   :  { %v91_v25 = vadd.f32 %v729_v12, %v90_v24 }
  0x99   :  { %v591_v16 = vpop.eup %590 }
  0x9a   :  { %139 = vst.msk [vmem:[#allocation2] sm:$0xff] %vm113_vm1, %v591_v16  ;;  %560 = vmatmul.msk.f32.vlgmr.msra.gmra.mxu2 %vm113_vm1, %v591_v16 }
  0x9b   :  { %311 = vmatpush.msra.mxu2 %v111_v3 }
  0x9c   :  { %v93_v30 = vpop.f32.mrf.mxu0 }
  0x9d   :  { %312 = vmatpush.msra.mxu2 %v110_v5  ;;  %v94_v31 = vadd.f32 %v729_v12, %v93_v30 }
  0x9f   :  { %313 = vmatpush.msra.mxu2 %v109_v6 }
  0xa1   :  { %314 = vmatpush.msra.mxu2 %v108_v7  ;;  %v322_v52 = vld [vmem:[#allocation2] sm:$0xff] }
  0xa4   :  { %v96_v40 = vpop.f32.mrf.mxu0 }
  0xa5   :  { %v97_v41 = vadd.f32 %v729_v12, %v96_v40 }
  0xac   :  { %v99_v47 = vpop.f32.mrf.mxu0 }
  0xad   :  { %v100_v48 = vadd.f32 %v729_v12, %v99_v47 }
  0xb4   :  { %v102_v57 = vpop.f32.mrf.mxu0 }
  0xb5   :  { %v103_v58 = vadd.f32 %v729_v12, %v102_v57 }
 0x11d   :  { %v160_v20 = vpop.f32.mrf.mxu2 }
 0x11e   :  { %v163_v21 = vadd.f32 %v160_v20, %v88_v19  ;;  %v106_v20 = vadd.f32 %v729_v12, %v724_v10 }
 0x120   :  { %592 = vtanh.f32 %v163_v21 }
 0x126   :  { %v593_v22 = vpop.eup %592 }
 0x127   :  { %165 = vst.msk [vmem:[#allocation2 + $0x8] sm:$0xff] %vm113_vm1, %v593_v22  ;;  %561 = vmatmul.msk.f32.vlgmr.msra.gmra.mxu3 %vm113_vm1, %v593_v22 }
 0x128   :  { %577 = vmatpush.msra.mxu3 %v333_v35 }
 0x12a   :  { %578 = vmatpush.msra.mxu3 %v332_v36 }
 0x12c   :  { %579 = vmatpush.msra.mxu3 %v331_v38 }
 0x12e   :  { %580 = vmatpush.msra.mxu3 %v330_v39  ;;  %v323_v54 = vld [vmem:[#allocation2 + $0x8] sm:$0xff] }
 0x1aa   :  { %v186_v26 = vpop.f32.mrf.mxu3 }
 0x1ab   :  { %v189_v27 = vadd.f32 %v186_v26, %v91_v25 }
 0x1ad   :  { %594 = vtanh.f32 %v189_v27 }
 0x1b3   :  { %v595_v28 = vpop.eup %594 }
 0x1b4   :  { %191 = vst.msk [vmem:[#allocation2 + $0x10] sm:$0xff] %vm113_vm1, %v595_v28  ;;  %562 = vmatmul.msk.f32.vlgmr.msra.gmra.mxu1 %vm113_vm1, %v595_v28 }
 0x1b5   :  { %374 = vmatpush.msra.mxu1 %v333_v35 }
 0x1b7   :  { %375 = vmatpush.msra.mxu1 %v332_v36 }
 0x1b9   :  { %376 = vmatpush.msra.mxu1 %v331_v38 }
 0x1bb   :  { %377 = vmatpush.msra.mxu1 %v330_v39  ;;  %v324_v55 = vld [vmem:[#allocation2 + $0x10] sm:$0xff] }
 0x231   :  { %v212_v32 = vpop.f32.mrf.mxu1 }
 0x232   :  { %v215_v33 = vadd.f32 %v212_v32, %v94_v31 }
 0x234   :  { %596 = vtanh.f32 %v215_v33 }
 0x23a   :  { %v597_v34 = vpop.eup %596 }
 0x23b   :  { %217 = vst.msk [vmem:[#allocation2 + $0x18] sm:$0xff] %vm113_vm1, %v597_v34  ;;  %563 = vmatmul.msk.f32.vlgmr.msrb.gmra.mxu2 %vm113_vm1, %v597_v34 }
 0x242   :  { %v325_v56 = vld [vmem:[#allocation2 + $0x18] sm:$0xff] }
 0x2be   :  { %v238_v42 = vpop.f32.mrf.mxu2 }
 0x2bf   :  { %v241_v43 = vadd.f32 %v238_v42, %v97_v41 }
 0x2c1   :  { %598 = vtanh.f32 %v241_v43 }
 0x2c7   :  { %v599_v44 = vpop.eup %598 }
 0x2c8   :  { %243 = vst.msk [vmem:[#allocation2 + $0x20] sm:$0xff] %vm113_vm1, %v599_v44  ;;  %564 = vmatmul.msk.f32.vlgmr.msrb.gmra.mxu3 %vm113_vm1, %v599_v44 }
 0x2cf   :  { %v326_v45 = vld [vmem:[#allocation2 + $0x20] sm:$0xff] }
 0x2d0   :  { %571 = vmatmul.msk.f32.vlgmr.msra.gmra.mxu3 %vm113_vm1, %v326_v45 }
 0x34b   :  { %v264_v49 = vpop.f32.mrf.mxu3 }
 0x34c   :  { %v267_v50 = vadd.f32 %v264_v49, %v100_v48 }
 0x34e   :  { %600 = vtanh.f32 %v267_v50 }
 0x353   :  { %v391_v61 = vpop.f32.mrf.mxu3 }
 0x354   :  { %v601_v51 = vpop.eup %600  ;;  %v392_v16 = vadd.f32 %v793_v0, %v391_v61 }
 0x355   :  { %269 = vst.msk [vmem:[#allocation2 + $0x28] sm:$0xff] %vm113_vm1, %v601_v51  ;;  %565 = vmatmul.msk.f32.vlgmr.msrb.gmra.mxu1 %vm113_vm1, %v601_v51 }
 0x356   :  { %v415_v17 = vsel %vm42_vm0, %v392_v16, -inf }
 0x35c   :  { %v327_v53 = vld [vmem:[#allocation2 + $0x28] sm:$0xff] }
 0x35d   :  { %567 = vmatmul.msk.f32.vlgmr.msra.gmra.mxu1 %vm113_vm1, %v322_v52  ;;  %572 = vmatmul.msk.f32.gmra.mxu3 %vm113_vm1, %v327_v53 }
 0x365   :  { %568 = vmatmul.msk.f32.gmra.mxu1 %vm113_vm1, %v323_v54 }
 0x36d   :  { %569 = vmatmul.msk.f32.gmra.mxu1 %vm113_vm1, %v324_v55 }
 0x375   :  { %570 = vmatmul.msk.f32.gmra.mxu1 %vm113_vm1, %v325_v56 }
 0x3d2   :  { %v290_v59 = vpop.f32.mrf.mxu1 }
 0x3d3   :  { %v293_v60 = vadd.f32 %v290_v59, %v103_v58 }
 0x3d5   :  { %602 = vtanh.f32 %v293_v60 }
 0x3da   :  { %v379_v62 = vpop.f32.mrf.mxu1 }
 0x3db   :  { %v603_v63 = vpop.eup %602  ;;  %v380_v18 = vadd.f32 %v793_v0, %v379_v62 }
 0x3dc   :  { %295 = vst.msk [vmem:[#allocation2 + $0x30] sm:$0xff] %vm113_vm1, %v603_v63  ;;  %566 = vmatmul.msk.f32.vlgmr.msra.gmra.mxu2 %vm113_vm1, %v603_v63 }
 0x3dd   :  { %v403_v19 = vsel %vm42_vm0, %v380_v18, -inf }
 0x3e0   :  { %v394_v1 = vpop.f32.mrf.mxu3 }
 0x3e1   :  { %v796_v2 = vadd.f32 %v793_v0, %v394_v1 }
 0x3e2   :  { %v382_v3 = vpop.f32.mrf.mxu1 }
 0x3e3   :  { %v383_v4 = vadd.f32 %v793_v0, %v382_v3  ;;  %v328_v5 = vld [vmem:[#allocation2 + $0x30] sm:$0xff]  ;;  %v418_v6 = vsel %vm42_vm0, %v796_v2, -inf }
 0x3e4   :  { %573 = vmatmul.msk.f32.gmra.mxu3 %vm113_vm1, %v328_v5  ;;  %419 = vmax.xlane.f32.xlu2 %v418_v6 }
 0x3e5   :  { %v406_v7 = vsel %vm42_vm0, %v383_v4, -inf }
 0x3e6   :  { %407 = vmax.xlane.f32.xlu0 %v406_v7 }
 0x3ea   :  { %v385_v8 = vpop.f32.mrf.mxu1 }
 0x3eb   :  { %v386_v9 = vadd.f32 %v793_v0, %v385_v8 }
 0x3ed   :  { %v409_v11 = vsel %vm42_vm0, %v386_v9, -inf }
 0x3ee   :  { %410 = vmax.xlane.f32.xlu0 %v409_v11 }
 0x3f2   :  { %v388_v13 = vpop.f32.mrf.mxu1 }
 0x3f3   :  { %v389_v14 = vadd.f32 %v793_v0, %v388_v13 }
 0x3f5   :  { %v412_v15 = vsel %vm42_vm0, %v389_v14, -inf }
 0x3f6   :  { %413 = vmax.xlane.f32.xlu1 %v412_v15 }
 0x3fe   :  { %416 = vmax.xlane.f32.xlu1 %v415_v17 }
 0x406   :  { %404 = vmax.xlane.f32.xlu1 %v403_v19 }
 0x457   :  { %v420_v41 = vpop.xlane.xlu2 %419 }
 0x458   :  { %v432_v53 = vsub.f32 %v796_v2, %v420_v41 }
 0x459   :  { %v408_v21 = vpop.xlane.xlu0 %407 }
 0x45a   :  { %v813_v24 = vsub.f32 %v383_v4, %v408_v21  ;;  %v445_v55 = vmul.f32 1.442695, %v432_v53 }
 0x45c   :  { %v437_v25 = vmul.f32 1.442695, %v813_v24 }
 0x45f   :  { %v316_v22 = vpop.f32.mrf.mxu2 }
 0x460   :  { %v319_v23 = vadd.f32 %v316_v22, %v106_v20 }
 0x461   :  { %v411_v47 = vpop.xlane.xlu0 %410 }
 0x462   :  { %604 = vtanh.f32 %v319_v23  ;;  %v834_v48 = vsub.f32 %v386_v9, %v411_v47 }
 0x463   :  { %606 = vpow2.f32 %v437_v25 }
 0x464   :  { %v439_v49 = vmul.f32 1.442695, %v834_v48 }
 0x467   :  { %v397_v26 = vpop.f32.mrf.mxu3 }
 0x468   :  { %v605_v27 = vpop.eup %604  ;;  %v398_v28 = vadd.f32 %v793_v0, %v397_v26 }
 0x469   :  { %321 = vst.msk [vmem:[#allocation2 + $0x38] sm:$0xff] %vm113_vm1, %v605_v27  ;;  %v414_v29 = vpop.xlane.xlu1 %413  ;;  %v607_v31 = vpop.eup %606 }
 0x46a   :  { %542 = vst.msk [vmem:[%s880_s8] sm:$0xff] %vm113_vm1, %v605_v27  ;;  %v822_v10 = vsub.f32 %v389_v14, %v414_v29  ;;  %v421_v12 = vsel %vm42_vm0, %v398_v28, -inf  ;;  %v454_v35 = vsel %vm42_vm0, %v607_v31, 0.0  ;;  %s638_s8 = smov 16  }
 0x46b   :  { %422 = vmax.xlane.f32.xlu2 %v421_v12 }
 0x46c   :  { %v441_v30 = vmul.f32 1.442695, %v822_v10 }
 0x46e   :  { %608 = vpow2.f32 %v441_v30 }
 0x470   :  { %v329_v32 = vld [vmem:[#allocation2 + $0x38] sm:$0xff] }
 0x471   :  { %574 = vmatmul.msk.f32.gmra.mxu3 %vm113_vm1, %v329_v32  ;;  %v417_v33 = vpop.xlane.xlu1 %416 }
 0x472   :  { %v827_v34 = vsub.f32 %v392_v16, %v417_v33 }
 0x473   :  { %455 = vadd.xlane.f32.xlu2 %v454_v35 }
 0x474   :  { %v609_v36 = vpop.eup %608  ;;  %v443_v37 = vmul.f32 1.442695, %v827_v34 }
 0x475   :  { %v460_v38 = vsel %vm42_vm0, %v609_v36, 0.0 }
 0x476   :  { %610 = vpow2.f32 %v443_v37  ;;  %461 = vadd.xlane.f32.xlu1 %v460_v38 }
 0x479   :  { %v405_v57 = vpop.xlane.xlu1 %404 }
 0x47a   :  { %v427_v59 = vsub.f32 %v380_v18, %v405_v57 }
 0x47c   :  { %v611_v39 = vpop.eup %610  ;;  %v435_v62 = vmul.f32 1.442695, %v427_v59 }
 0x47d   :  { %v463_v40 = vsel %vm42_vm0, %v611_v39, 0.0 }
 0x47e   :  { %464 = vadd.xlane.f32.xlu2 %v463_v40 }
 0x4de   :  { %v423_v42 = vpop.xlane.xlu2 %422 }
 0x4df   :  { %v433_v43 = vsub.f32 %v398_v28, %v423_v42 }
 0x4e1   :  { %v447_v44 = vmul.f32 1.442695, %v433_v43 }
 0x4e3   :  { %612 = vpow2.f32 %v447_v44 }
 0x4e6   :  { %v456_v50 = vpop.xlane.xlu2 %455 }
 0x4e7   :  { %614 = vlog2.f32 %v456_v50 }
 0x4e8   :  { %616 = vpow2.f32 %v439_v49 }
 0x4e9   :  { %v613_v45 = vpop.eup %612  ;;  %618 = vpow2.f32 %v445_v55  ;;  %v462_v4 = vpop.xlane.xlu1 %461 }
 0x4ea   :  { %v469_v46 = vsel %vm42_vm0, %v613_v45, 0.0  ;;  %620 = vpow2.f32 %v435_v62 }
 0x4eb   :  { %470 = vadd.xlane.f32.xlu1 %v469_v46  ;;  %622 = vlog2.f32 %v462_v4 }
 0x4ed   :  { %v615_v56 = vpop.eup %614 }
 0x4ee   :  { %v617_v58 = vpop.eup %616  ;;  %v478_v60 = vmul.f32 0.6931472, %v615_v56 }
 0x4ef   :  { %v457_v61 = vsel %vm42_vm0, %v617_v58, 0.0 }
 0x4f0   :  { %v492_v63 = vsub.f32 %v813_v24, %v478_v60 }
 0x4f1   :  { %v465_v25 = vpop.xlane.xlu2 %464 }
 0x4f4   :  { %v400_v51 = vpop.f32.mrf.mxu3 }
 0x4f5   :  { %v401_v52 = vadd.f32 %v793_v0, %v400_v51  ;;  %v619_v0 = vpop.eup %618 }
 0x4f6   :  { %v466_v1 = vsel %vm42_vm0, %v619_v0, 0.0  ;;  %v621_v2 = vpop.eup %620 }
 0x4f7   :  { %v424_v54 = vsel %vm42_vm0, %v401_v52, -inf  ;;  %v451_v3 = vsel %vm42_vm0, %v621_v2, 0.0  ;;  %v623_v5 = vpop.eup %622 }
 0x4f8   :  { %425 = vmax.xlane.f32.xlu0 %v424_v54  ;;  %v482_v6 = vmul.f32 0.6931472, %v623_v5 }
 0x4fa   :  { %v494_v7 = vsub.f32 %v822_v10, %v482_v6 }
 0x500   :  { %458 = vadd.xlane.f32.xlu0 %v457_v61 }
 0x504   :  { %501 = vrot.lane.b32.xlu1 %v492_v63, %s638_s8 }
 0x508   :  { %467 = vadd.xlane.f32.xlu0 %v466_v1 }
 0x510   :  { %452 = vadd.xlane.f32.xlu0 %v451_v3 }
 0x524   :  { %513 = vrot.lane.b32.xlu0 %v494_v7, %s639_s19 }
 0x55e   :  { %v471_v8 = vpop.xlane.xlu1 %470 }
 0x55f   :  { %624 = vlog2.f32 %v471_v8 }
 0x565   :  { %v625_v9 = vpop.eup %624 }
 0x566   :  { %v488_v11 = vmul.f32 0.6931472, %v625_v9 }
 0x568   :  { %v497_v13 = vsub.f32 %v433_v43, %v488_v11 }
 0x56a   :  { %531 = vrot.lane.b32.xlu0 %v497_v13, %s640_s20 }
 0x56b   :  { %v426_v14 = vpop.xlane.xlu0 %425 }
 0x56c   :  { %v434_v15 = vsub.f32 %v401_v52, %v426_v14 }
 0x56e   :  { %v449_v16 = vmul.f32 1.442695, %v434_v15 }
 0x570   :  { %626 = vpow2.f32 %v449_v16 }
 0x573   :  { %v459_v17 = vpop.xlane.xlu0 %458 }
 0x576   :  { %v627_v18 = vpop.eup %626  ;;  %v502_v31 = vpop.permute.xlu1 %501 }
 0x577   :  { %v472_v19 = vsel %vm42_vm0, %v627_v18, 0.0 }
 0x578   :  { %473 = vadd.xlane.f32.xlu2 %v472_v19 }
 0x57b   :  { %v468_v20 = vpop.xlane.xlu0 %467 }
 0x57c   :  { %628 = vlog2.f32 %v468_v20 }
 0x57d   :  { %630 = vlog2.f32 %v459_v17 }
 0x582   :  { %v629_v21 = vpop.eup %628 }
 0x583   :  { %v486_v22 = vmul.f32 0.6931472, %v629_v21  ;;  %v453_v23 = vpop.xlane.xlu0 %452  ;;  %v631_v26 = vpop.eup %630 }
 0x584   :  { %632 = vlog2.f32 %v453_v23  ;;  %v480_v28 = vmul.f32 0.6931472, %v631_v26 }
 0x585   :  { %v496_v24 = vsub.f32 %v432_v53, %v486_v22  ;;  %634 = vlog2.f32 %v465_v25 }
 0x586   :  { %v493_v12 = vsub.f32 %v834_v48, %v480_v28 }
 0x587   :  { %525 = vrot.lane.b32.xlu1 %v496_v24, %s641_s21 }
 0x58a   :  { %v633_v27 = vpop.eup %632 }
 0x58b   :  { %v476_v29 = vmul.f32 0.6931472, %v633_v27  ;;  %v635_v30 = vpop.eup %634 }
 0x58c   :  { %v484_v32 = vmul.f32 0.6931472, %v635_v30 }
 0x58d   :  { %v491_v10 = vsub.f32 %v427_v59, %v476_v29 }
 0x58e   :  { %v495_v33 = vsub.f32 %v827_v34, %v484_v32 }
 0x58f   :  { %499 = vst.msk [vmem:[%s881_s7] sm:$0xff] %vm42_vm0, %v491_v10 }
 0x590   :  { %507 = vrot.lane.b32.xlu2 %v493_v12, %s642_s22  ;;  %505 = vst.msk [vmem:[%s881_s7] sm:$0xff] %vm504_vm2, %v502_v31 }
 0x596   :  { %v514_v39 = vpop.permute.xlu0 %513 }
 0x598   :  { %519 = vrot.lane.b32.xlu2 %v495_v33, %s643_s25 }
 0x5dc   :  { %v532_v42 = vpop.permute.xlu0 %531 }
 0x5eb   :  { %v474_v35 = vpop.xlane.xlu2 %473 }
 0x5ec   :  { %636 = vlog2.f32 %v474_v35 }
 0x5f2   :  { %v637_v36 = vpop.eup %636 }
 0x5f3   :  { %v490_v37 = vmul.f32 0.6931472, %v637_v36  ;;  %v508_v38 = vpop.permute.xlu2 %507 }
 0x5f4   :  { %511 = vst.msk [vmem:[%s881_s7] sm:$0xff] %vm510_vm3, %v508_v38 }
 0x5f5   :  { %v498_v40 = vsub.f32 %v434_v15, %v490_v37  ;;  %517 = vst.msk [vmem:[%s881_s7] sm:$0xff] %vm516_vm4, %v514_v39 }
 0x5f7   :  { %537 = vrot.lane.b32.xlu2 %v498_v40, %s644_s29 }
 0x5f9   :  { %v526_v41 = vpop.permute.xlu1 %525 }
 0x5fb   :  { %v520_v34 = vpop.permute.xlu2 %519 }
 0x5fc   :  { %523 = vst.msk [vmem:[%s881_s7] sm:$0xff] %vm522_vm5, %v520_v34 }
 0x5fd   :  { %529 = vst.msk [vmem:[%s881_s7] sm:$0xff] %vm528_vm6, %v526_v41 }
 0x5fe   :  { %535 = vst.msk [vmem:[%s881_s7] sm:$0xff] %vm534_vm7, %v532_v42 }
 0x651   :  { %v538_v43 = vpop.permute.xlu2 %537 }
 0x652   :  { %541 = vst.msk [vmem:[%s881_s7] sm:$0xff] %vm540_vm8, %v538_v43 }

</bundles_post_ra>
